<compile_context>
chip_gen: v5e
topology: v5e:2x2
jax: 0.10.0
libtpu: 0.0.40
codegen_flags: <defaults>
</compile_context>

<pallas_src>
import functools

import jax
import jax.numpy as jnp
from jax.experimental import pallas as pl
from jax.experimental.pallas import tpu as pltpu


def _focal_loss_kernel(logits_ref, targets_ref, out_ref, *,
                       alpha, gamma, ignore_index, class_axis):
    # class_axis == 0: logits (C, T), targets (1, T)   [lane-dense tokens, small C]
    # class_axis == 1: logits (T, C), targets (T, 1)   [native (N, C) layout, C >= 128]
    x = logits_ref[...]                                   # input dtype (f32 / bf16)
    t = targets_ref[...]                                  # int32

    # Numerically stable log-sum-exp over the class axis.  max is exact in any dtype;
    # the f32 upcast is folded into its first use (no standalone f32 copy of the tile).
    m = jnp.max(x, axis=class_axis, keepdims=True)
    z = jnp.exp(x.astype(jnp.float32) - m.astype(jnp.float32))
    lse = jnp.log(jnp.sum(z, axis=class_axis, keepdims=True)) + m.astype(jnp.float32)

    # Target-class logit via select-reduce (no dynamic gather, no f32 one-hot temp).
    class_ids = jax.lax.broadcasted_iota(jnp.int32, x.shape, class_axis)
    sel = jnp.where(class_ids == t, x, jnp.zeros_like(x))
    tgt_logit = jnp.sum(sel, axis=class_axis, keepdims=True).astype(jnp.float32)

    # Rows labelled ignore_index contribute exactly 0.  The wrapper pads *targets* of
    # ragged / out-of-range positions with ignore_index, and jnp.where (not a multiply)
    # guarantees any inf/NaN garbage read from the unpadded logits tail is discarded.
    valid = t != ignore_index
    ce = jnp.where(valid, jnp.maximum(lse - tgt_logit, 0.0), 0.0)

    # Focal modulation (gamma == 2 specialised to a single VPU multiply, no EUP pow).
    pt = jnp.exp(-ce)
    one_m_pt = jnp.maximum(1.0 - pt, 0.0)
    if float(gamma) == 2.0:
        mod = one_m_pt * one_m_pt
    elif float(gamma) == 1.0:
        mod = one_m_pt
    else:
        mod = one_m_pt ** gamma
    focal = alpha * mod * ce

    # Lane-dense (1, 1, 128) partial-sum store; wrapper reads element [i, 0, 0].
    out_ref[...] = jnp.broadcast_to(jnp.sum(focal), out_ref.shape)


def focal_loss(outputs, targets, alpha=0.25, gamma=2.0, ignore_index=-100,
               max_tile_n=None, target_block_bytes=1 << 20):
    """Pallas-TPU focal loss.

    outputs: (N, C) float logits (f32 or bf16 -- streamed without a wrapper-side cast).
    targets: (N,) int labels; `ignore_index` rows contribute 0 to the loss.
    """
    n, c = outputs.shape
    itemsize = jnp.dtype(outputs.dtype).itemsize

    # --- Token-tile sizing: ~1 MiB of logits per block (amortises the ~0.35 us per
    #     grid-step overhead), capped so large N still yields >= 4 tiles (megacore +
    #     pipeline depth), always a multiple of 128 lanes.
    tile_n = max(target_block_bytes // (c * itemsize), 128)
    tile_n = min(tile_n, max(pl.cdiv(n, 4), 128))
    if max_tile_n is not None:
        tile_n = min(tile_n, max(int(max_tile_n), 128))
    tile_n = max((tile_n // 128) * 128, 128)
    if tile_n >= n:               # single full-extent block (no alignment constraint)
        tile_n = n
        n_pad = n
    else:
        n_pad = pl.cdiv(n, tile_n) * tile_n
    num_tiles = n_pad // tile_n

    # --- Targets: cheap (4*N bytes) pad with ignore_index; logits are NOT padded.
    targets_i = targets.astype(jnp.int32)
    if n_pad != n:
        targets_i = jnp.pad(targets_i, (0, n_pad - n), constant_values=ignore_index)

    use_native = c >= 128         # class axis already lane-sized -> zero data movement
    if use_native:
        logits_in = outputs                                   # (N, C) streamed as-is
        targets_in = targets_i.reshape(n_pad, 1)
        logits_spec = pl.BlockSpec((tile_n, c), lambda i: (i, 0))
        targets_spec = pl.BlockSpec((tile_n, 1), lambda i: (i, 0))
        class_axis = 1
        blk_elems = tile_n * (pl.cdiv(c, 128) * 128)          # lane-padded VMEM tile
    else:
        logits_in = outputs.T                                 # (C, N): one transpose, no pad
        targets_in = targets_i.reshape(1, n_pad)
        logits_spec = pl.BlockSpec((c, tile_n), lambda i: (0, i))
        targets_spec = pl.BlockSpec((1, tile_n), lambda i: (0, i))
        class_axis = 0
        blk_elems = (pl.cdiv(c, 8) * 8) * tile_n              # sublane-padded VMEM tile

    # --- Explicit VMEM budget: double-buffered input block + generous allowance for
    #     in-kernel f32/i32 temporaries.  Clamped to [16 MiB, 64 MiB] so roofline-sized
    #     tiles compile on v5e (16 MiB default scoped) and never exceed v7x's 64 MiB.
    vmem_needed = 2 * blk_elems * itemsize + 8 * blk_elems * 4 + 4 * tile_n * 4 + (1 << 20)
    vmem_limit_bytes = int(min(max(vmem_needed, 16 * 1024 * 1024), 64 * 1024 * 1024))

    cost = pl.CostEstimate(
        flops=int(6 * n * c),
        transcendentals=int(n * c + 3 * n),
        bytes_accessed=int(n * c * itemsize + n * 4 + num_tiles * 128 * 4),
    )

    kernel = functools.partial(
        _focal_loss_kernel,
        alpha=float(alpha), gamma=float(gamma),
        ignore_index=int(ignore_index), class_axis=class_axis,
    )

    partials = pl.pallas_call(
        kernel,
        out_shape=jax.ShapeDtypeStruct((num_tiles, 1, 128), jnp.float32),
        grid=(num_tiles,),
        in_specs=[logits_spec, targets_spec],
        out_specs=pl.BlockSpec((1, 1, 128), lambda i: (i, 0, 0)),
        compiler_params=pltpu.CompilerParams(
            dimension_semantics=("parallel",),
            vmem_limit_bytes=vmem_limit_bytes,
        ),
        cost_estimate=cost,
    )(logits_in, targets_in)

    # torch .mean() divides by the total row count N (ignored rows count as 0).
    return jnp.sum(partials[:, 0, 0]) / jnp.float32(n)


def _reference_focal_loss(outputs, targets, alpha=0.25, gamma=2.0, ignore_index=-100):
    # Pure-JAX reference mirroring torch CrossEntropyLoss(reduction='none', ignore_index).
    logits = outputs.astype(jnp.float32)
    lse = jax.nn.logsumexp(logits, axis=-1)
    safe_t = jnp.where(targets == ignore_index, 0, targets)
    tgt = jnp.take_along_axis(logits, safe_t[:, None], axis=-1)[:, 0]
    ce = jnp.where(targets == ignore_index, 0.0, lse - tgt)
    pt = jnp.exp(-ce)
    return jnp.mean(alpha * (1.0 - pt) ** gamma * ce)


if __name__ == "__main__":
    key = jax.random.PRNGKey(0)
    k1, k2, k3, k4, k5, k6, k7, k8 = jax.random.split(key, 8)

    # --- Test 1: NER-style shapes: batch=2, seq=8 -> N=16 token positions, C=8 tag classes.
    batch, seq, num_tags = 2, 8, 8
    n = batch * seq
    logits = jax.random.normal(k1, (n, num_tags), dtype=jnp.float32)
    targets = jax.random.randint(k2, (n,), 0, num_tags, dtype=jnp.int32)
    targets = targets.at[3].set(-100).at[12].set(-100)     # padding positions

    loss = focal_loss(logits, targets, alpha=0.25, gamma=2.0, ignore_index=-100)
    loss = jax.block_until_ready(loss)
    ref = _reference_focal_loss(logits, targets, alpha=0.25, gamma=2.0, ignore_index=-100)
    assert jnp.allclose(loss, ref, atol=1e-5, rtol=1e-4), (loss, ref)

    # --- Test 2: multi-tile class-major path, non-aligned N, ragged (unpadded) last block.
    n2 = 4 * 75                                             # N = 300 -> 3 tiles of 128
    logits2 = jax.random.normal(k3, (n2, num_tags), dtype=jnp.float32)
    targets2 = jax.random.randint(k4, (n2,), 0, num_tags, dtype=jnp.int32)
    targets2 = targets2.at[0].set(-100).at[n2 - 1].set(-100)

    loss2 = focal_loss(logits2, targets2, alpha=0.25, gamma=2.0, ignore_index=-100,
                       max_tile_n=128)
    loss2 = jax.block_until_ready(loss2)
    ref2 = _reference_focal_loss(logits2, targets2, alpha=0.25, gamma=2.0, ignore_index=-100)
    assert jnp.allclose(loss2, ref2, atol=1e-5, rtol=1e-4), (loss2, ref2)

    # --- Test 3: native (N, C) path with C = 128 (no wrapper transpose), bf16 logits.
    n3, c3 = 300, 128
    logits3 = jax.random.normal(k5, (n3, c3), dtype=jnp.bfloat16)
    targets3 = jax.random.randint(k6, (n3,), 0, c3, dtype=jnp.int32)
    targets3 = targets3.at[7].set(-100).at[200].set(-100)

    loss3 = focal_loss(logits3, targets3, alpha=0.25, gamma=2.0, ignore_index=-100,
                       max_tile_n=128)
    loss3 = jax.block_until_ready(loss3)
    ref3 = _reference_focal_loss(logits3, targets3, alpha=0.25, gamma=2.0, ignore_index=-100)
    assert jnp.allclose(loss3, ref3, atol=1e-5, rtol=1e-4), (loss3, ref3)

    # --- Test 4: default auto tile sizing (multi-tile, ragged last block, no max_tile_n).
    n4 = 4800
    logits4 = jax.random.normal(k7, (n4, num_tags), dtype=jnp.float32)
    targets4 = jax.random.randint(k8, (n4,), 0, num_tags, dtype=jnp.int32)
    targets4 = targets4.at[0].set(-100).at[n4 // 2].set(-100)

    loss4 = focal_loss(logits4, targets4, alpha=0.25, gamma=2.0, ignore_index=-100)
    loss4 = jax.block_until_ready(loss4)
    ref4 = _reference_focal_loss(logits4, targets4, alpha=0.25, gamma=2.0, ignore_index=-100)
    assert jnp.allclose(loss4, ref4, atol=1e-5, rtol=1e-4), (loss4, ref4)

    print("KERNEL_OK")
</pallas_src>

<mosaic_0001>
module attributes {stable_mosaic.version = 11 : i64} {
  func.func @_focal_loss_kernel(%arg0: i32, %arg1: memref<8x16xf32, #tpu.memory_space<vmem>>, %arg2: memref<1x16xi32, #tpu.memory_space<vmem>>, %arg3: memref<1x1x128xf32, #tpu.memory_space<vmem>>) attributes {dimension_semantics = [#tpu.dimension_semantics<parallel>], iteration_bounds = array<i64: 1>, scalar_prefetch = 0 : i64, scratch_operands = 0 : i64, tpu.core_type = #tpu.core_type<tc>, window_params = [{transform_indices = @transform_0, window_bounds = array<i64: 8, 16>}, {transform_indices = @transform_1, window_bounds = array<i64: 1, 16>}, {transform_indices = @transform_2, window_bounds = array<i64: 1, 1, 128>}]} {
    %c0 = arith.constant 0 : index
    %c0_0 = arith.constant 0 : index
    %0 = vector.load %arg1[%c0, %c0_0] : memref<8x16xf32, #tpu.memory_space<vmem>>, vector<8x16xf32>
    %c0_1 = arith.constant 0 : index
    %c0_2 = arith.constant 0 : index
    %1 = vector.load %arg2[%c0_1, %c0_2] : memref<1x16xi32, #tpu.memory_space<vmem>>, vector<1x16xi32>
    %cst = arith.constant dense<0xFF800000> : vector<16xf32>
    %2 = vector.multi_reduction <maximumf>, %0, %cst [0] : vector<8x16xf32> to vector<16xf32>
    %3 = vector.shape_cast %2 : vector<16xf32> to vector<1x16xf32>
    %4 = vector.broadcast %3 : vector<1x16xf32> to vector<8x16xf32>
    %5 = arith.subf %0, %4 : vector<8x16xf32>
    %6 = math.exp %5 : vector<8x16xf32>
    %cst_3 = arith.constant dense<0.000000e+00> : vector<16xf32>
    %7 = vector.multi_reduction <add>, %6, %cst_3 [0] : vector<8x16xf32> to vector<16xf32>
    %8 = vector.shape_cast %7 : vector<16xf32> to vector<1x16xf32>
    %9 = math.log %8 : vector<1x16xf32>
    %10 = arith.addf %9, %3 : vector<1x16xf32>
    %11 = tpu.iota {dimensions = array<i32: 0>} : vector<8x16xi32>
    %12 = vector.broadcast %1 : vector<1x16xi32> to vector<8x16xi32>
    %13 = arith.cmpi eq, %11, %12 : vector<8x16xi32>
    %cst_4 = arith.constant 0.000000e+00 : f32
    %14 = vector.broadcast %cst_4 : f32 to vector<8x16xf32>
    %15 = arith.select %13, %0, %14 : vector<8x16xi1>, vector<8x16xf32>
    %cst_5 = arith.constant dense<0.000000e+00> : vector<16xf32>
    %16 = vector.multi_reduction <add>, %15, %cst_5 [0] : vector<8x16xf32> to vector<16xf32>
    %17 = vector.shape_cast %16 : vector<16xf32> to vector<1x16xf32>
    %c-100_i32 = arith.constant -100 : i32
    %18 = vector.broadcast %c-100_i32 : i32 to vector<1x16xi32>
    %19 = arith.cmpi ne, %1, %18 : vector<1x16xi32>
    %20 = arith.subf %10, %17 : vector<1x16xf32>
    %cst_6 = arith.constant 0.000000e+00 : f32
    %21 = vector.broadcast %cst_6 : f32 to vector<1x16xf32>
    %22 = arith.maximumf %20, %21 : vector<1x16xf32>
    %cst_7 = arith.constant 0.000000e+00 : f32
    %23 = vector.broadcast %cst_7 : f32 to vector<1x16xf32>
    %24 = arith.select %19, %22, %23 : vector<1x16xi1>, vector<1x16xf32>
    %cst_8 = arith.constant 0.000000e+00 : f32
    %25 = vector.broadcast %cst_8 : f32 to vector<1x16xf32>
    %26 = arith.subf %25, %24 : vector<1x16xf32>
    %27 = math.exp %26 : vector<1x16xf32>
    %cst_9 = arith.constant 1.000000e+00 : f32
    %28 = vector.broadcast %cst_9 : f32 to vector<1x16xf32>
    %29 = arith.subf %28, %27 : vector<1x16xf32>
    %cst_10 = arith.constant 0.000000e+00 : f32
    %30 = vector.broadcast %cst_10 : f32 to vector<1x16xf32>
    %31 = arith.maximumf %29, %30 : vector<1x16xf32>
    %32 = arith.mulf %31, %31 : vector<1x16xf32>
    %cst_11 = arith.constant 2.500000e-01 : f32
    %33 = vector.broadcast %cst_11 : f32 to vector<1x16xf32>
    %34 = arith.mulf %33, %32 : vector<1x16xf32>
    %35 = arith.mulf %34, %24 : vector<1x16xf32>
    %36 = vector.shape_cast %35 : vector<1x16xf32> to vector<1x1x16xf32>
    %cst_12 = arith.constant dense<0.000000e+00> : vector<1xf32>
    %37 = vector.multi_reduction <add>, %36, %cst_12 [1, 2] : vector<1x1x16xf32> to vector<1xf32>
    %38 = vector.shape_cast %37 : vector<1xf32> to vector<1x1x1xf32>
    %39 = vector.extract %38[0, 0, 0] : f32 from vector<1x1x1xf32>
    %40 = vector.broadcast %39 : f32 to vector<1x1x128xf32>
    %c0_13 = arith.constant 0 : index
    %c0_14 = arith.constant 0 : index
    %c0_15 = arith.constant 0 : index
    %41 = vector.load %arg3[%c0_13, %c0_14, %c0_15] : memref<1x1x128xf32, #tpu.memory_space<vmem>>, vector<1x1x128xf32>
    tpu.vector_store %arg3[%c0_13, %c0_14, %c0_15], %40 {strides = array<i32>} : memref<1x1x128xf32, #tpu.memory_space<vmem>>, vector<1x1x128xf32>,
    return
  }
  func.func @transform_0(%arg0: i32) -> (i32, i32) {
    %c0_i32 = arith.constant 0 : i32
    %c0_i32_0 = arith.constant 0 : i32
    return %c0_i32, %arg0 : i32, i32
  }
  func.func @transform_1(%arg0: i32) -> (i32, i32) {
    %c0_i32 = arith.constant 0 : i32
    %c0_i32_0 = arith.constant 0 : i32
    return %c0_i32, %arg0 : i32, i32
  }
  func.func @transform_2(%arg0: i32) -> (i32, i32, i32) {
    %c0_i32 = arith.constant 0 : i32
    %c0_i32_0 = arith.constant 0 : i32
    %c0_i32_1 = arith.constant 0 : i32
    return %arg0, %c0_i32, %c0_i32_0 : i32, i32, i32
  }
}

</mosaic_0001>

<bundles_post_ra>
// kernel: tpu_custom_call.1
= control target key start
LH: loop header
LB: loop body
LE: loop exit
PB: predicated region body
PF: predicated region fallthrough
CT: control target
= control target key end

     0   :  { %7 = vsyncpa [#allocation3], 0  ;;  %s238_s0 = inlined_call_operand.hbm [shape: f32[8,16], index: 0, kind: input, shape index: {}]   ;;  %s239_s1 = inlined_call_operand.hbm [shape: s32[1,16], index: 1, kind: input, shape index: {}]   ;;  %s240_s2 = inlined_call_operand.hbm [shape: f32[1,1,128], index: 2, kind: output, shape index: {}]  }
   0x1   :  { %8 = vsyncpa [#allocation6], 0 }
   0x2   :  { %9 = vsyncpa [#allocation4], 0  ;;  %s15_s11 = sshll.u32 %s238_s0, 4  ;;  %s208_s12 = smov [#allocation2]   ;;  %s16_s11 = int_to_ptr.hbm [resolvable:$true] %s15_s11 }
   0x3   :  { %s17_s13 = sshll.u32 %s208_s12, 4  ;;  %s26_s16 = sshll.u32 %s239_s1, 4  ;;  %s18_s13 = int_to_ptr.vmem [resolvable:$true] %s17_s13  ;;  %s27_s16 = int_to_ptr.hbm [resolvable:$true] %s26_s16 }
   0x4   :  { %20 = dma.hbm_to_vmem [thread:$0]  %s16_s11, 128, %s18_s13, [#allocation3]  }
   0x5   :  { %s209_s17 = smov [#allocation5]  }
   0x6   :  { %s28_s18 = sshll.u32 %s209_s17, 4  ;;  %s29_s18 = int_to_ptr.vmem [resolvable:$true] %s28_s18 }
   0x7   :  { %31 = dma.hbm_to_vmem [thread:$0]  %s27_s16, 16, %s29_s18, [#allocation6]  }
   0x8   :  { %202 = dma.done.wait [#allocation3], 128  }
   0x9   :  { %203 = vsyncadd [#allocation3], 4294967168 }
   0xa   :  { %204 = dma.done.wait [#allocation6], 16  }
   0xb   :  { %205 = vsyncadd [#allocation6], 4294967280  ;;  %vm42_vm0 = vcmask 130048   ;;  %v40_v0 = vld [vmem:[#allocation2] sm:$0xff]  ;;  %v63_v6 = vlaneseq  ;;  %v123_v10 = vld [vmem:[#allocation5] ss:$0 sm:$0xff] }
   0xc   :  { %v43_v1 = vsel %vm42_vm0, %v40_v0, -inf  ;;  %v41_v31 = vld [vmem:[#allocation5] sm:$0x1]  ;;  %vm87_vm3 = vcmask 122880   ;;  %s210_s0 = smov [#allocation7]   ;;  %s107_s21 = sshll.u32 %s240_s2, 4  ;;  %s108_s21 = int_to_ptr.hbm [resolvable:$true] %s107_s21 }
   0xd   :  { %v44_v2 = vrot.slane %v43_v1, 4  ;;  %v64_v9 = vshrl.u32 %v63_v6, 7  ;;  %vm75_vm2 = vcmp.ne.s32.totalorder %v41_v31, 4294967196  ;;  %s105_s1 = sshll.u32 %s210_s0, 4  ;;  %s106_s1 = int_to_ptr.vmem [resolvable:$true] %s105_s1 }
   0xf   :  { %v45_v3 = vmax.f32 %v43_v1, %v44_v2  ;;  %vm66_vm1 = vcmp.eq.s32.totalorder %v64_v9, %v123_v10 }
  0x10   :  { %v67_v13 = vsel %vm66_vm1, %v40_v0, 0.0 }
  0x11   :  { %v46_v4 = vrot.slane %v45_v3, 2  ;;  %v68_v14 = vsel %vm42_vm0, %v67_v13, 0.0 }
  0x12   :  { %v69_v17 = vrot.slane %v68_v14, 4 }
  0x13   :  { %v47_v5 = vmax.f32 %v45_v3, %v46_v4 }
  0x14   :  { %v70_v20 = vadd.f32 %v69_v17, %v68_v14 }
  0x15   :  { %v48_v7 = vrot.slane %v47_v5, 1 }
  0x16   :  { %v71_v23 = vrot.slane %v70_v20, 2 }
  0x17   :  { %v49_v8 = vmax.f32 %v47_v5, %v48_v7 }
  0x18   :  { %v72_v26 = vadd.f32 %v71_v23, %v70_v20 }
  0x19   :  { %v50_v11 = vsub.f32 %v40_v0, %v49_v8 }
  0x1a   :  { %v73_v27 = vrot.slane %v72_v26, 1 }
  0x1b   :  { %v51_v12 = vmul.f32 1.442695, %v50_v11 }
  0x1c   :  { %v74_v30 = vadd.f32 %v73_v27, %v72_v26 }
  0x1d   :  { %124 = vpow2.f32 %v51_v12 }
  0x23   :  { %v125_v15 = vpop.eup %124 }
  0x24   :  { %v53_v16 = vsel %vm42_vm0, %v125_v15, 0.0 }
  0x25   :  { %v54_v18 = vrot.slane %v53_v16, 4 }
  0x27   :  { %v55_v19 = vadd.f32 %v54_v18, %v53_v16 }
  0x29   :  { %v56_v21 = vrot.slane %v55_v19, 2 }
  0x2b   :  { %v57_v22 = vadd.f32 %v56_v21, %v55_v19 }
  0x2d   :  { %v58_v24 = vrot.slane %v57_v22, 1 }
  0x2f   :  { %v59_v25 = vadd.f32 %v58_v24, %v57_v22 }
  0x31   :  { %126 = vlog2.f32 %v59_v25 }
  0x37   :  { %v127_v28 = vpop.eup %126 }
  0x38   :  { %v61_v29 = vmul.f32 0.6931472, %v127_v28 }
  0x3a   :  { %v62_v32 = vadd.f32 %v61_v29, %v49_v8 }
  0x3c   :  { %v76_v33 = vsub.f32 %v62_v32, %v74_v30 }
  0x3e   :  { %v77_v34 = vmax.f32 %v76_v33, 0.0 }
  0x40   :  { %v78_v35 = vsel %vm75_vm2, %v77_v34, 0.0 }
  0x41   :  { %v79_v36 = vsub.f32 0.0, %v78_v35 }
  0x43   :  { %v80_v37 = vmul.f32 1.442695, %v79_v36 }
  0x45   :  { %128 = vpow2.f32 %v80_v37 }
  0x4b   :  { %v129_v38 = vpop.eup %128 }
  0x4c   :  { %v82_v39 = vsub.f32 1.0, %v129_v38 }
  0x4e   :  { %v83_v40 = vmax.f32 %v82_v39, 0.0 }
  0x50   :  { %v84_v41 = vmul.f32 %v83_v40, %v83_v40 }
  0x52   :  { %v85_v42 = vmul.f32 0.25, %v84_v41 }
  0x54   :  { %v86_v43 = vmul.f32 %v85_v42, %v78_v35 }
  0x56   :  { %v88_v44 = vsel %vm87_vm3, %v86_v43, 0.0 }
  0x57   :  { %89 = vadd.xlane.f32.xlu0 %v88_v44 }
  0xca   :  { %v90_v45 = vpop.xlane.xlu0 %89 }
  0xcb   :  { %v91_v46 = vrot.slane %v90_v45, 4 }
  0xcd   :  { %v92_v47 = vadd.f32 %v91_v46, %v90_v45 }
  0xcf   :  { %v93_v48 = vrot.slane %v92_v47, 2 }
  0xd1   :  { %v94_v49 = vadd.f32 %v93_v48, %v92_v47 }
  0xd3   :  { %v95_v50 = vrot.slane %v94_v49, 1 }
  0xd5   :  { %v96_v51 = vadd.f32 %v95_v50, %v94_v49 }
  0xd7   :  { %118 = vpush %v96_v51 }
 0x108   :  { %s119_s22 = spop %118 }
 0x109   :  { %v98_v52 = vstv %s119_s22 }
 0x10a   :  { %99 = vst [vmem:[#allocation7] sm:$0x1] %v98_v52 }
 0x10b   :  { %110 = dma.vmem_to_hbm [thread:$0]  %s106_s1, 16, %s108_s21, [#allocation4]  }
 0x10c   :  { %206 = dma.done.wait [#allocation4], 16  }
 0x10d   :  { %207 = vsyncadd [#allocation4], 4294967280 }
 0x10e   :  { %115 = vsyncpa [#allocation3], 1 }
 0x10f   :  { %116 = vsyncpa [#allocation6], 1 }
 0x110   :  { %117 = vsyncpa [#allocation4], 1 }

</bundles_post_ra>
